<compile_context>
chip_gen: v6e
topology: v6e:2x2x1
jax: 0.10.0
libtpu: 0.0.40
codegen_flags: <defaults>
</compile_context>

<pallas_src>
import functools

import jax
import jax.numpy as jnp
from jax.experimental import pallas as pl
from jax.experimental.pallas import tpu as pltpu


def _adapter_kernel(x_ref, w1_ref, b1_ref, w2_ref, b2_ref, o_ref, *, add_residual):
    """One row tile: out = [x +] ReLU(ReLU(x @ W1 + b1) @ W2 + b2).

    x_ref / o_ref : (tr, kH)   -- lane-dense (kH is 128 or the full width)
    w1_ref        : (kH, kA)   b1_ref: (1, kA)
    w2_ref        : (kA, kH)   b2_ref: (1, kH)
    (k > 1 => block-diagonal packed weights; math identical per token.)
    """
    x = x_ref[...]

    # fc1 + ReLU  (native-dtype operands, f32 accumulation on the MXU)
    h = jnp.dot(x, w1_ref[...], preferred_element_type=jnp.float32)
    h = jnp.maximum(h + b1_ref[...].astype(jnp.float32), 0.0)

    # fc2 + ReLU
    h = jnp.dot(h.astype(w2_ref.dtype), w2_ref[...],
                preferred_element_type=jnp.float32)
    h = jnp.maximum(h + b2_ref[...].astype(jnp.float32), 0.0)

    if add_residual:
        h = h + x.astype(jnp.float32)

    o_ref[...] = h.astype(o_ref.dtype)


def _cdiv(a, b):
    return -(-a // b)


def _round_up(n, m):
    return _cdiv(n, m) * m


def _pack_factor(H):
    # Pack k tokens per row so the kernel's last dim is exactly 128 lanes.
    if H < 128 and 128 % H == 0:
        return 128 // H
    return 1


def _choose_tm(M, unit, H, A, itemsize, target):
    """Pick a row-tile size (in tokens), multiple of `unit`."""
    budget = 24 << 20                  # conservative tile budget (v7x-safe)
    tm = max(unit, (target // unit) * unit)
    # Shrink until (double-buffered) I/O tiles + f32 temporaries fit.
    while tm > unit and (4 * tm * H * itemsize + tm * (A + H) * 4) > budget:
        tm = max(unit, ((tm // 2) // unit) * unit)
    # Never bigger than the padded token count.
    tm = min(tm, _round_up(M, unit))
    # Keep >= 2 grid steps when possible so both v7x TensorCores get work.
    if M > unit and _cdiv(M, tm) < 2:
        tm = max(unit, _round_up(_cdiv(M, 2), unit))
    return tm


def adapter_forward(x, w1, b1, w2, b2, add_residual=True, *, tm_target=1024):
    """x: (..., H).  w1: (H, A), b1: (A,), w2: (A, H), b2: (H,)."""
    orig_shape = x.shape
    H = orig_shape[-1]
    A = w1.shape[1]
    assert w1.shape == (H, A) and w2.shape == (A, H)
    assert b1.shape == (A,) and b2.shape == (H,)

    x2d = x.reshape(-1, H)
    M = x2d.shape[0]

    k = _pack_factor(H)
    unit = 8 * k                                  # sublane multiple in tokens
    itemsize = jnp.dtype(x.dtype).itemsize
    tm = _choose_tm(M, unit, H, A, itemsize, tm_target)

    m_pad = _round_up(M, tm)
    if m_pad != M:
        x2d = jnp.pad(x2d, ((0, m_pad - M), (0, 0)))

    # Lane-dense packing: k consecutive tokens per packed row (last dim k*H).
    x_packed = x2d.reshape(m_pad // k, k * H)

    if k > 1:
        # Block-diagonal weights / tiled biases: per-token math is unchanged,
        # but the kernel operates on 128-lane rows with no relayout.
        w1p = jnp.kron(jnp.eye(k, dtype=w1.dtype), w1)      # (k*H, k*A)
        w2p = jnp.kron(jnp.eye(k, dtype=w2.dtype), w2)      # (k*A, k*H)
        b1p = jnp.tile(b1, k).reshape(1, k * A)
        b2p = jnp.tile(b2, k).reshape(1, k * H)
    else:
        w1p, w2p = w1, w2
        b1p, b2p = b1.reshape(1, A), b2.reshape(1, H)

    kH, kA = k * H, k * A
    rows = m_pad // k                 # packed rows in the array
    tr = tm // k                      # packed rows per block (multiple of 8)

    kernel = functools.partial(_adapter_kernel, add_residual=add_residual)

    # VMEM estimate: x/out tiles double-buffered, weights resident, f32 temps.
    w_itemsize = jnp.dtype(w1.dtype).itemsize
    vmem_est = (4 * tm * H * itemsize
                + (2 * kH * kA + kA + kH) * w_itemsize
                + tm * (A + H) * 4)
    vmem_limit = int(min(max(2 * vmem_est, 32 << 20), 48 << 20))

    def _run(single_buffer_weights):
        # Weights / biases never change across grid steps (constant index_map);
        # single-buffer them so they don't pay 2x VMEM.
        resident = (dict(pipeline_mode=pl.Buffered(1))
                    if single_buffer_weights else {})
        grid_spec = pltpu.PrefetchScalarGridSpec(
            num_scalar_prefetch=0,
            grid=(rows // tr,),
            in_specs=[
                pl.BlockSpec((tr, kH), lambda i: (i, 0)),              # x tile
                pl.BlockSpec((kH, kA), lambda i: (0, 0), **resident),  # W1
                pl.BlockSpec((1, kA), lambda i: (0, 0), **resident),   # b1
                pl.BlockSpec((kA, kH), lambda i: (0, 0), **resident),  # W2
                pl.BlockSpec((1, kH), lambda i: (0, 0), **resident),   # b2
            ],
            out_specs=pl.BlockSpec((tr, kH), lambda i: (i, 0)),
        )
        out = pl.pallas_call(
            kernel,
            out_shape=jax.ShapeDtypeStruct((rows, kH), x.dtype),
            grid_spec=grid_spec,
            compiler_params=pltpu.CompilerParams(
                dimension_semantics=("parallel",),
                vmem_limit_bytes=vmem_limit),
        )(x_packed, w1p, b1p, w2p, b2p)
        return jax.block_until_ready(out)

    try:
        out_packed = _run(True)
    except Exception:
        # Fallback for jax versions that reject single-buffered pallas_call
        # inputs; identical math, default double-buffering.
        out_packed = _run(False)

    out = out_packed.reshape(m_pad, H)[:M]
    return out.reshape(orig_shape)


if __name__ == "__main__":
    def make_inputs(key, batch, seq, hidden, adapter, dtype=jnp.float32):
        kx, kw1, kb1, kw2, kb2 = jax.random.split(key, 5)
        x = jax.random.normal(kx, (batch, seq, hidden), dtype=dtype)
        w1 = (jax.random.uniform(kw1, (hidden, adapter), dtype=dtype,
                                 minval=-1.0, maxval=1.0) / jnp.sqrt(hidden))
        b1 = (jax.random.uniform(kb1, (adapter,), dtype=dtype,
                                 minval=-1.0, maxval=1.0) / jnp.sqrt(hidden))
        w2 = (jax.random.uniform(kw2, (adapter, hidden), dtype=dtype,
                                 minval=-1.0, maxval=1.0) / jnp.sqrt(adapter))
        b2 = (jax.random.uniform(kb2, (hidden,), dtype=dtype,
                                 minval=-1.0, maxval=1.0) / jnp.sqrt(adapter))
        return x, w1, b1, w2, b2

    def _reference(x, w1, b1, w2, b2, add_residual=True):
        h = jnp.maximum(x @ w1 + b1, 0.0)
        h = jnp.maximum(h @ w2 + b2, 0.0)
        return x + h if add_residual else h

    # Primary config implied by the module: hidden_size=32, adapter_size=16,
    # input (batch=2, seq=8, hidden=32).
    x, w1, b1, w2, b2 = make_inputs(jax.random.PRNGKey(0), 2, 8, 32, 16)

    out = adapter_forward(x, w1, b1, w2, b2, add_residual=True)
    ref = _reference(x, w1, b1, w2, b2, add_residual=True)
    assert out.shape == x.shape
    assert jnp.allclose(out, ref, atol=1e-5, rtol=1e-5)

    # add_residual=False path
    out_nr = adapter_forward(x, w1, b1, w2, b2, add_residual=False)
    ref_nr = _reference(x, w1, b1, w2, b2, add_residual=False)
    assert jnp.allclose(out_nr, ref_nr, atol=1e-5, rtol=1e-5)

    # Ragged token count (batch*seq=15) and H >= 128 (no lane-packing) path.
    x2, w1b, b1b, w2b, b2b = make_inputs(jax.random.PRNGKey(1), 3, 5, 128, 64)
    out2 = adapter_forward(x2, w1b, b1b, w2b, b2b, add_residual=True)
    ref2 = _reference(x2, w1b, b1b, w2b, b2b, add_residual=True)
    assert out2.shape == x2.shape
    assert jnp.allclose(out2, ref2, atol=1e-4, rtol=1e-4)

    print("KERNEL_OK")
</pallas_src>

<mosaic_0001>
module attributes {stable_mosaic.version = 11 : i64} {
  func.func @_adapter_kernel(%arg0: i32, %arg1: memref<8x128xf32, #tpu.memory_space<vmem>>, %arg2: memref<128x64xf32, #tpu.memory_space<vmem>>, %arg3: memref<1x64xf32, #tpu.memory_space<vmem>>, %arg4: memref<64x128xf32, #tpu.memory_space<vmem>>, %arg5: memref<1x128xf32, #tpu.memory_space<vmem>>, %arg6: memref<8x128xf32, #tpu.memory_space<vmem>>) attributes {dimension_semantics = [#tpu.dimension_semantics<parallel>], iteration_bounds = array<i64: 1>, scalar_prefetch = 0 : i64, scratch_operands = 0 : i64, tpu.core_type = #tpu.core_type<tc>, window_params = [{transform_indices = @transform_0, window_bounds = array<i64: 8, 128>}, {pipeline_mode = #tpu.pipeline_mode<synchronous>, transform_indices = @transform_1, window_bounds = array<i64: 128, 64>}, {pipeline_mode = #tpu.pipeline_mode<synchronous>, transform_indices = @transform_2, window_bounds = array<i64: 1, 64>}, {pipeline_mode = #tpu.pipeline_mode<synchronous>, transform_indices = @transform_3, window_bounds = array<i64: 64, 128>}, {pipeline_mode = #tpu.pipeline_mode<synchronous>, transform_indices = @transform_4, window_bounds = array<i64: 1, 128>}, {transform_indices = @transform_5, window_bounds = array<i64: 8, 128>}]} {
    %c0 = arith.constant 0 : index
    %c0_0 = arith.constant 0 : index
    %0 = vector.load %arg1[%c0, %c0_0] : memref<8x128xf32, #tpu.memory_space<vmem>>, vector<8x128xf32>
    %c0_1 = arith.constant 0 : index
    %c0_2 = arith.constant 0 : index
    %1 = vector.load %arg2[%c0_1, %c0_2] : memref<128x64xf32, #tpu.memory_space<vmem>>, vector<128x64xf32>
    %cst = arith.constant dense<0.000000e+00> : vector<8x64xf32>
    %2 = tpu.matmul %0, %1, %cst {dimension_numbers = #tpu.dot_dimension_numbers<[1], [0], [0], [1], [0, 0, 1, 1], [], []>} : vector<8x128xf32>, vector<128x64xf32>, vector<8x64xf32> -> vector<8x64xf32>
    %c0_3 = arith.constant 0 : index
    %c0_4 = arith.constant 0 : index
    %3 = vector.load %arg3[%c0_3, %c0_4] : memref<1x64xf32, #tpu.memory_space<vmem>>, vector<1x64xf32>
    %4 = vector.broadcast %3 : vector<1x64xf32> to vector<8x64xf32>
    %5 = arith.addf %2, %4 : vector<8x64xf32>
    %cst_5 = arith.constant 0.000000e+00 : f32
    %6 = vector.broadcast %cst_5 : f32 to vector<8x64xf32>
    %7 = arith.maximumf %5, %6 : vector<8x64xf32>
    %c0_6 = arith.constant 0 : index
    %c0_7 = arith.constant 0 : index
    %8 = vector.load %arg4[%c0_6, %c0_7] : memref<64x128xf32, #tpu.memory_space<vmem>>, vector<64x128xf32>
    %cst_8 = arith.constant dense<0.000000e+00> : vector<8x128xf32>
    %9 = tpu.matmul %7, %8, %cst_8 {dimension_numbers = #tpu.dot_dimension_numbers<[1], [0], [0], [1], [0, 0, 1, 1], [], []>} : vector<8x64xf32>, vector<64x128xf32>, vector<8x128xf32> -> vector<8x128xf32>
    %c0_9 = arith.constant 0 : index
    %c0_10 = arith.constant 0 : index
    %10 = vector.load %arg5[%c0_9, %c0_10] : memref<1x128xf32, #tpu.memory_space<vmem>>, vector<1x128xf32>
    %11 = vector.broadcast %10 : vector<1x128xf32> to vector<8x128xf32>
    %12 = arith.addf %9, %11 : vector<8x128xf32>
    %cst_11 = arith.constant 0.000000e+00 : f32
    %13 = vector.broadcast %cst_11 : f32 to vector<8x128xf32>
    %14 = arith.maximumf %12, %13 : vector<8x128xf32>
    %15 = arith.addf %14, %0 : vector<8x128xf32>
    %c0_12 = arith.constant 0 : index
    %c0_13 = arith.constant 0 : index
    %16 = vector.load %arg6[%c0_12, %c0_13] : memref<8x128xf32, #tpu.memory_space<vmem>>, vector<8x128xf32>
    tpu.vector_store %arg6[%c0_12, %c0_13], %15 {strides = array<i32>} : memref<8x128xf32, #tpu.memory_space<vmem>>, vector<8x128xf32>,
    return
  }
  func.func @transform_0(%arg0: i32) -> (i32, i32) {
    %c0_i32 = arith.constant 0 : i32
    %c0_i32_0 = arith.constant 0 : i32
    return %arg0, %c0_i32 : i32, i32
  }
  func.func @transform_1(%arg0: i32) -> (i32, i32) {
    %c0_i32 = arith.constant 0 : i32
    %c0_i32_0 = arith.constant 0 : i32
    %c0_i32_1 = arith.constant 0 : i32
    return %c0_i32, %c0_i32_0 : i32, i32
  }
  func.func @transform_2(%arg0: i32) -> (i32, i32) {
    %c0_i32 = arith.constant 0 : i32
    %c0_i32_0 = arith.constant 0 : i32
    %c0_i32_1 = arith.constant 0 : i32
    return %c0_i32, %c0_i32_0 : i32, i32
  }
  func.func @transform_3(%arg0: i32) -> (i32, i32) {
    %c0_i32 = arith.constant 0 : i32
    %c0_i32_0 = arith.constant 0 : i32
    %c0_i32_1 = arith.constant 0 : i32
    return %c0_i32, %c0_i32_0 : i32, i32
  }
  func.func @transform_4(%arg0: i32) -> (i32, i32) {
    %c0_i32 = arith.constant 0 : i32
    %c0_i32_0 = arith.constant 0 : i32
    %c0_i32_1 = arith.constant 0 : i32
    return %c0_i32, %c0_i32_0 : i32, i32
  }
  func.func @transform_5(%arg0: i32) -> (i32, i32) {
    %c0_i32 = arith.constant 0 : i32
    %c0_i32_0 = arith.constant 0 : i32
    return %arg0, %c0_i32 : i32, i32
  }
}

module attributes {stable_mosaic.version = 11 : i64} {
  func.func @_adapter_kernel(%arg0: i32, %arg1: memref<8x128xf32, #tpu.memory_space<vmem>>, %arg2: memref<128x64xf32, #tpu.memory_space<vmem>>, %arg3: memref<1x64xf32, #tpu.memory_space<vmem>>, %arg4: memref<64x128xf32, #tpu.memory_space<vmem>>, %arg5: memref<1x128xf32, #tpu.memory_space<vmem>>, %arg6: memref<8x128xf32, #tpu.memory_space<vmem>>) attributes {dimension_semantics = [#tpu.dimension_semantics<parallel>], iteration_bounds = array<i64: 1>, scalar_prefetch = 0 : i64, scratch_operands = 0 : i64, tpu.core_type = #tpu.core_type<tc>, window_params = [{transform_indices = @transform_0, window_bounds = array<i64: 8, 128>}, {pipeline_mode = #tpu.pipeline_mode<synchronous>, transform_indices = @transform_1, window_bounds = array<i64: 128, 64>}, {pipeline_mode = #tpu.pipeline_mode<synchronous>, transform_indices = @transform_2, window_bounds = array<i64: 1, 64>}, {pipeline_mode = #tpu.pipeline_mode<synchronous>, transform_indices = @transform_3, window_bounds = array<i64: 64, 128>}, {pipeline_mode = #tpu.pipeline_mode<synchronous>, transform_indices = @transform_4, window_bounds = array<i64: 1, 128>}, {transform_indices = @transform_5, window_bounds = array<i64: 8, 128>}]} {
    %c0 = arith.constant 0 : index
    %c0_0 = arith.constant 0 : index
    %0 = vector.load %arg1[%c0, %c0_0] : memref<8x128xf32, #tpu.memory_space<vmem>>, vector<8x128xf32>
    %c0_1 = arith.constant 0 : index
    %c0_2 = arith.constant 0 : index
    %1 = vector.load %arg2[%c0_1, %c0_2] : memref<128x64xf32, #tpu.memory_space<vmem>>, vector<128x64xf32>
    %cst = arith.constant dense<0.000000e+00> : vector<8x64xf32>
    %2 = tpu.matmul %0, %1, %cst {dimension_numbers = #tpu.dot_dimension_numbers<[1], [0], [0], [1], [0, 0, 1, 1], [], []>} : vector<8x128xf32>, vector<128x64xf32>, vector<8x64xf32> -> vector<8x64xf32>
    %c0_3 = arith.constant 0 : index
    %c0_4 = arith.constant 0 : index
    %3 = vector.load %arg3[%c0_3, %c0_4] : memref<1x64xf32, #tpu.memory_space<vmem>>, vector<1x64xf32>
    %4 = vector.broadcast %3 : vector<1x64xf32> to vector<8x64xf32>
    %5 = arith.addf %2, %4 : vector<8x64xf32>
    %cst_5 = arith.constant 0.000000e+00 : f32
    %6 = vector.broadcast %cst_5 : f32 to vector<8x64xf32>
    %7 = arith.maximumf %5, %6 : vector<8x64xf32>
    %c0_6 = arith.constant 0 : index
    %c0_7 = arith.constant 0 : index
    %8 = vector.load %arg4[%c0_6, %c0_7] : memref<64x128xf32, #tpu.memory_space<vmem>>, vector<64x128xf32>
    %cst_8 = arith.constant dense<0.000000e+00> : vector<8x128xf32>
    %9 = tpu.matmul %7, %8, %cst_8 {dimension_numbers = #tpu.dot_dimension_numbers<[1], [0], [0], [1], [0, 0, 1, 1], [], []>} : vector<8x64xf32>, vector<64x128xf32>, vector<8x128xf32> -> vector<8x128xf32>
    %c0_9 = arith.constant 0 : index
    %c0_10 = arith.constant 0 : index
    %10 = vector.load %arg5[%c0_9, %c0_10] : memref<1x128xf32, #tpu.memory_space<vmem>>, vector<1x128xf32>
    %11 = vector.broadcast %10 : vector<1x128xf32> to vector<8x128xf32>
    %12 = arith.addf %9, %11 : vector<8x128xf32>
    %cst_11 = arith.constant 0.000000e+00 : f32
    %13 = vector.broadcast %cst_11 : f32 to vector<8x128xf32>
    %14 = arith.maximumf %12, %13 : vector<8x128xf32>
    %15 = arith.addf %14, %0 : vector<8x128xf32>
    %c0_12 = arith.constant 0 : index
    %c0_13 = arith.constant 0 : index
    %16 = vector.load %arg6[%c0_12, %c0_13] : memref<8x128xf32, #tpu.memory_space<vmem>>, vector<8x128xf32>
    tpu.vector_store %arg6[%c0_12, %c0_13], %15 {strides = array<i32>} : memref<8x128xf32, #tpu.memory_space<vmem>>, vector<8x128xf32>,
    return
  }
  func.func @transform_0(%arg0: i32) -> (i32, i32) {
    %c0_i32 = arith.constant 0 : i32
    %c0_i32_0 = arith.constant 0 : i32
    return %arg0, %c0_i32 : i32, i32
  }
  func.func @transform_1(%arg0: i32) -> (i32, i32) {
    %c0_i32 = arith.constant 0 : i32
    %c0_i32_0 = arith.constant 0 : i32
    %c0_i32_1 = arith.constant 0 : i32
    return %c0_i32, %c0_i32_0 : i32, i32
  }
  func.func @transform_2(%arg0: i32) -> (i32, i32) {
    %c0_i32 = arith.constant 0 : i32
    %c0_i32_0 = arith.constant 0 : i32
    %c0_i32_1 = arith.constant 0 : i32
    return %c0_i32, %c0_i32_0 : i32, i32
  }
  func.func @transform_3(%arg0: i32) -> (i32, i32) {
    %c0_i32 = arith.constant 0 : i32
    %c0_i32_0 = arith.constant 0 : i32
    %c0_i32_1 = arith.constant 0 : i32
    return %c0_i32, %c0_i32_0 : i32, i32
  }
  func.func @transform_4(%arg0: i32) -> (i32, i32) {
    %c0_i32 = arith.constant 0 : i32
    %c0_i32_0 = arith.constant 0 : i32
    %c0_i32_1 = arith.constant 0 : i32
    return %c0_i32, %c0_i32_0 : i32, i32
  }
  func.func @transform_5(%arg0: i32) -> (i32, i32) {
    %c0_i32 = arith.constant 0 : i32
    %c0_i32_0 = arith.constant 0 : i32
    return %arg0, %c0_i32 : i32, i32
  }
}

</mosaic_0001>

<bundles_post_ra>
// kernel: tpu_custom_call.1
= control target key start
LH: loop header
LB: loop body
LE: loop exit
PB: predicated region body
PF: predicated region fallthrough
CT: control target
= control target key end

     0   :  { %v330_v1 = vmov 0.0   ;;  %vm331_vm0 = vmmov 0   ;;  %s473_s0 = inlined_call_operand.vmem [shape: f32[8,128], index: 0, kind: input, shape index: {}]   ;;  %s474_s1 = inlined_call_operand.vmem [shape: f32[128,64], index: 1, kind: input, shape index: {}]   ;;  %s475_s2 = inlined_call_operand.vmem [shape: f32[1,64], index: 2, kind: input, shape index: {}]   ;;  %s476_s3 = inlined_call_operand.vmem [shape: f32[64,128], index: 3, kind: input, shape index: {}]   ;;  %s477_s4 = inlined_call_operand.vmem [shape: f32[1,128], index: 4, kind: input, shape index: {}]   ;;  %s478_s5 = inlined_call_operand.hbm [shape: f32[8,128], index: 5, kind: output, shape index: {}]  }
   0x1   :  { %v37_v0 = vld [vmem:[%s474_s1 + $0x78] sm:$0xff]  ;;  %251 = vmatprep.subr.mxu0 %v330_v1  ;;  %v36_v2 = vld [vmem:[%s474_s1 + $0x70] sm:$0xff]  ;;  %283 = vmatprep.mubr.msk.f32.mxu0 %vm331_vm0, %v330_v1  ;;  %v35_v3 = vld [vmem:[%s474_s1 + $0x68] sm:$0xff] }
   0x2   :  { %252 = vmatpush3.msra.mxu0 %v37_v0  ;;  %286 = vmatprep.subr.mxu1 %v330_v1  ;;  %v34_v4 = vld [vmem:[%s474_s1 + $0x60] sm:$0xff]  ;;  %v123_v5 = vld [vmem:[%s476_s3 + $0x38] sm:$0xff]  ;;  %v122_v6 = vld [vmem:[%s476_s3 + $0x30] sm:$0xff] }
   0x3   :  { %253 = vmatprep.subr.mxu0 %v330_v1  ;;  %302 = vmatprep.mubr.msk.f32.mxu1 %vm331_vm0, %v330_v1  ;;  %v33_v7 = vld [vmem:[%s474_s1 + $0x58] sm:$0xff]  ;;  %v121_v8 = vld [vmem:[%s476_s3 + $0x28] sm:$0xff] }
   0x4   :  { %254 = vmatpush3.msra.mxu0 %v36_v2  ;;  %287 = vmatpush3.msra.mxu1 %v123_v5 }
   0x5   :  { %255 = vmatprep.subr.mxu0 %v330_v1  ;;  %288 = vmatprep.subr.mxu1 %v330_v1 }
   0x6   :  { %256 = vmatpush3.msra.mxu0 %v35_v3 }
   0x7   :  { %257 = vmatprep.subr.mxu0 %v330_v1 }
   0x8   :  { %10 = vsyncpa [#allocation3], 0  ;;  %258 = vmatpush3.msra.mxu0 %v34_v4  ;;  %289 = vmatpush3.msra.mxu1 %v122_v6  ;;  %v32_v9 = vld [vmem:[%s474_s1 + $0x50] sm:$0xff]  ;;  %v120_v10 = vld [vmem:[%s476_s3 + $0x20] sm:$0xff]  ;;  %vm131_vm1 = vcmask 523264   ;;  %s332_s20 = smov [#allocation2]  }
   0x9   :  { %259 = vmatprep.subr.mxu0 %v330_v1  ;;  %290 = vmatprep.subr.mxu1 %v330_v1  ;;  %v31_v11 = vld [vmem:[%s474_s1 + $0x48] sm:$0xff]  ;;  %v119_v12 = vld [vmem:[%s476_s3 + $0x18] sm:$0xff]  ;;  %v30_v13 = vld [vmem:[%s474_s1 + $0x40] sm:$0xff] }
   0xa   :  { %260 = vmatpush3.msra.mxu0 %v33_v7  ;;  %291 = vmatpush3.msra.mxu1 %v121_v8  ;;  %v29_v14 = vld [vmem:[%s474_s1 + $0x38] sm:$0xff]  ;;  %v28_v15 = vld [vmem:[%s474_s1 + $0x30] sm:$0xff]  ;;  %v27_v16 = vld [vmem:[%s474_s1 + $0x28] sm:$0xff] }
   0xb   :  { %261 = vmatprep.subr.mxu0 %v330_v1  ;;  %292 = vmatprep.subr.mxu1 %v330_v1  ;;  %v26_v17 = vld [vmem:[%s474_s1 + $0x20] sm:$0xff]  ;;  %v25_v18 = vld [vmem:[%s474_s1 + $0x18] sm:$0xff]  ;;  %v24_v19 = vld [vmem:[%s474_s1 + $0x10] sm:$0xff] }
   0xc   :  { %262 = vmatpush3.msra.mxu0 %v32_v9  ;;  %293 = vmatpush3.msra.mxu1 %v120_v10  ;;  %v23_v20 = vld [vmem:[%s474_s1 + $0x8] sm:$0xff]  ;;  %v22_v21 = vld [vmem:[%s474_s1] sm:$0xff]  ;;  %v118_v23 = vld [vmem:[%s476_s3 + $0x10] sm:$0xff] }
   0xd   :  { %263 = vmatprep.subr.mxu0 %v330_v1  ;;  %294 = vmatprep.subr.mxu1 %v330_v1  ;;  %v21_v22 = vld [vmem:[%s473_s0] sm:$0xff]  ;;  %v117_v24 = vld [vmem:[%s476_s3 + $0x8] sm:$0xff] }
   0xe   :  { %264 = vmatpush3.msra.mxu0 %v31_v11  ;;  %295 = vmatpush3.msra.mxu1 %v119_v12  ;;  %v116_v25 = vld [vmem:[%s476_s3] sm:$0xff]  ;;  %s214_s3 = sshll.u32 %s332_s20, 4  ;;  %s215_s3 = int_to_ptr.vmem [resolvable:$true] %s214_s3 }
   0xf   :  { %265 = vmatprep.subr.mxu0 %v330_v1  ;;  %296 = vmatprep.subr.mxu1 %v330_v1  ;;  %v222_v26 = vld [vmem:[%s475_s2] ss:$0 sm:$0xff]  ;;  %s308_s2 = scalar_lea.vmem %s215_s3, 128  ;;  %p313_p1 = scmp.lt.s32.totalorder %s215_s3, %s215_s3 }
  0x10   :  { %266 = vmatpush3.msra.mxu0 %v30_v13  ;;  %297 = vmatpush3.msra.mxu1 %v118_v23  ;;  %v223_v31 = vld [vmem:[%s477_s4] ss:$0 sm:$0xff]  ;;  %p309_p0 = scmp.ne.s32.totalorder %s215_s3, %s308_s2  ;;  %p314_p2 = scmp.lt.s32.totalorder %s308_s2, %s308_s2 }
  0x11   :  { %267 = vmatprep.subr.mxu0 %v330_v1  ;;  %298 = vmatprep.subr.mxu1 %v330_v1 }
  0x12   :  { %268 = vmatpush3.msra.mxu0 %v29_v14  ;;  %299 = vmatpush3.msra.mxu1 %v117_v24  ;;  %p315_p3 = por %p314_p2, %p313_p1 }
  0x13   :  { %269 = vmatprep.subr.mxu0 %v330_v1  ;;  %300 = vmatprep.subr.mxu1 %v330_v1 }
  0x14   :  { %270 = vmatpush3.msra.mxu0 %v28_v15  ;;  %301 = vmatpush3.msra.mxu1 %v116_v25  ;;  %p316_p4 = pnand %p315_p3, %p309_p0 }
  0x15   :  { %271 = vmatprep.subr.mxu0 %v330_v1 }
  0x16   :  { %272 = vmatpush3.msra.mxu0 %v27_v16 }
  0x17   :  { %273 = vmatprep.subr.mxu0 %v330_v1 }
  0x18   :  { %274 = vmatpush3.msra.mxu0 %v26_v17 }
  0x19   :  { %275 = vmatprep.subr.mxu0 %v330_v1 }
  0x1a   :  { %276 = vmatpush3.msra.mxu0 %v25_v18 }
  0x1b   :  { %277 = vmatprep.subr.mxu0 %v330_v1 }
  0x1c   :  { %278 = vmatpush3.msra.mxu0 %v24_v19 }
  0x1d   :  { %279 = vmatprep.subr.mxu0 %v330_v1 }
  0x1e   :  { %280 = vmatpush3.msra.mxu0 %v23_v20 }
  0x1f   :  { %281 = vmatprep.subr.mxu0 %v330_v1 }
  0x20   :  { %282 = vmatpush3.msra.mxu0 %v22_v21 }
  0x21   :  { %284 = vmatmul.mubr.f32.vlgmr.msra.gmra.mxu0 %v21_v22 }
  0xe1   :  { %v111_v27 = vpop.f32.mrf.mxu0 }
  0xe2   :  { %v112_v28 = vadd.f32 %v222_v26, %v111_v27 }
  0xe3   :  { %v285_v29 = vpop.f32.mrf.mxu0 }
  0xe4   :  { %v115_v30 = vmax.f32 %v112_v28, 0.0 }
  0xe6   :  { %303 = vmatmul.mubr.msk.f32.vlgmr.msra.gmra.mxu1 %vm131_vm1, %v115_v30 }
 0x1a6   :  { %v201_v32 = vpop.f32.mrf.mxu1 }
 0x1a7   :  { %v202_v33 = vadd.f32 %v223_v31, %v201_v32 }
 0x1a8   :  { %v304_v34 = vpop.f32.mrf.mxu1 }
 0x1a9   :  { %v205_v35 = vmax.f32 %v202_v33, 0.0 }
 0x1ab   :  { %v206_v36 = vadd.f32 %v205_v35, %v21_v22 }
 0x1ad   :  { %207 = vst [vmem:[#allocation2] sm:$0xff] %v206_v36 }
 0x1ae   :  { %319 = shalt.err (!%p316_p4)
}
 0x1af   :  { %217 = dma.vmem_to_hbm [thread:$0]  %s215_s3, 128, %s478_s5, [#allocation3]  }
 0x1b0   :  { %328 = dma.done.wait [#allocation3], 128  }
 0x1b1   :  { %329 = vsyncadd [#allocation3], 4294967168 }
 0x1b2   :  { %221 = vsyncpa [#allocation3], 1 }

// kernel: tpu_custom_call.1
= control target key start
LH: loop header
LB: loop body
LE: loop exit
PB: predicated region body
PF: predicated region fallthrough
CT: control target
= control target key end

     0   :  { %v330_v1 = vmov 0.0   ;;  %vm331_vm0 = vmmov 0   ;;  %s473_s0 = inlined_call_operand.vmem [shape: f32[8,128], index: 0, kind: input, shape index: {}]   ;;  %s474_s1 = inlined_call_operand.vmem [shape: f32[128,64], index: 1, kind: input, shape index: {}]   ;;  %s475_s2 = inlined_call_operand.vmem [shape: f32[1,64], index: 2, kind: input, shape index: {}]   ;;  %s476_s3 = inlined_call_operand.vmem [shape: f32[64,128], index: 3, kind: input, shape index: {}]   ;;  %s477_s4 = inlined_call_operand.vmem [shape: f32[1,128], index: 4, kind: input, shape index: {}]   ;;  %s478_s5 = inlined_call_operand.hbm [shape: f32[8,128], index: 5, kind: output, shape index: {}]  }
   0x1   :  { %v37_v0 = vld [vmem:[%s474_s1 + $0x78] sm:$0xff]  ;;  %251 = vmatprep.subr.mxu0 %v330_v1  ;;  %v36_v2 = vld [vmem:[%s474_s1 + $0x70] sm:$0xff]  ;;  %283 = vmatprep.mubr.msk.f32.mxu0 %vm331_vm0, %v330_v1  ;;  %v35_v3 = vld [vmem:[%s474_s1 + $0x68] sm:$0xff] }
   0x2   :  { %252 = vmatpush3.msra.mxu0 %v37_v0  ;;  %286 = vmatprep.subr.mxu1 %v330_v1  ;;  %v34_v4 = vld [vmem:[%s474_s1 + $0x60] sm:$0xff]  ;;  %v123_v5 = vld [vmem:[%s476_s3 + $0x38] sm:$0xff]  ;;  %v122_v6 = vld [vmem:[%s476_s3 + $0x30] sm:$0xff] }
   0x3   :  { %253 = vmatprep.subr.mxu0 %v330_v1  ;;  %302 = vmatprep.mubr.msk.f32.mxu1 %vm331_vm0, %v330_v1  ;;  %v33_v7 = vld [vmem:[%s474_s1 + $0x58] sm:$0xff]  ;;  %v121_v8 = vld [vmem:[%s476_s3 + $0x28] sm:$0xff] }
   0x4   :  { %254 = vmatpush3.msra.mxu0 %v36_v2  ;;  %287 = vmatpush3.msra.mxu1 %v123_v5 }
   0x5   :  { %255 = vmatprep.subr.mxu0 %v330_v1  ;;  %288 = vmatprep.subr.mxu1 %v330_v1 }
   0x6   :  { %256 = vmatpush3.msra.mxu0 %v35_v3 }
   0x7   :  { %257 = vmatprep.subr.mxu0 %v330_v1 }
   0x8   :  { %10 = vsyncpa [#allocation3], 0  ;;  %258 = vmatpush3.msra.mxu0 %v34_v4  ;;  %289 = vmatpush3.msra.mxu1 %v122_v6  ;;  %v32_v9 = vld [vmem:[%s474_s1 + $0x50] sm:$0xff]  ;;  %v120_v10 = vld [vmem:[%s476_s3 + $0x20] sm:$0xff]  ;;  %vm131_vm1 = vcmask 523264   ;;  %s332_s20 = smov [#allocation2]  }
   0x9   :  { %259 = vmatprep.subr.mxu0 %v330_v1  ;;  %290 = vmatprep.subr.mxu1 %v330_v1  ;;  %v31_v11 = vld [vmem:[%s474_s1 + $0x48] sm:$0xff]  ;;  %v119_v12 = vld [vmem:[%s476_s3 + $0x18] sm:$0xff]  ;;  %v30_v13 = vld [vmem:[%s474_s1 + $0x40] sm:$0xff] }
   0xa   :  { %260 = vmatpush3.msra.mxu0 %v33_v7  ;;  %291 = vmatpush3.msra.mxu1 %v121_v8  ;;  %v29_v14 = vld [vmem:[%s474_s1 + $0x38] sm:$0xff]  ;;  %v28_v15 = vld [vmem:[%s474_s1 + $0x30] sm:$0xff]  ;;  %v27_v16 = vld [vmem:[%s474_s1 + $0x28] sm:$0xff] }
   0xb   :  { %261 = vmatprep.subr.mxu0 %v330_v1  ;;  %292 = vmatprep.subr.mxu1 %v330_v1  ;;  %v26_v17 = vld [vmem:[%s474_s1 + $0x20] sm:$0xff]  ;;  %v25_v18 = vld [vmem:[%s474_s1 + $0x18] sm:$0xff]  ;;  %v24_v19 = vld [vmem:[%s474_s1 + $0x10] sm:$0xff] }
   0xc   :  { %262 = vmatpush3.msra.mxu0 %v32_v9  ;;  %293 = vmatpush3.msra.mxu1 %v120_v10  ;;  %v23_v20 = vld [vmem:[%s474_s1 + $0x8] sm:$0xff]  ;;  %v22_v21 = vld [vmem:[%s474_s1] sm:$0xff]  ;;  %v118_v23 = vld [vmem:[%s476_s3 + $0x10] sm:$0xff] }
   0xd   :  { %263 = vmatprep.subr.mxu0 %v330_v1  ;;  %294 = vmatprep.subr.mxu1 %v330_v1  ;;  %v21_v22 = vld [vmem:[%s473_s0] sm:$0xff]  ;;  %v117_v24 = vld [vmem:[%s476_s3 + $0x8] sm:$0xff] }
   0xe   :  { %264 = vmatpush3.msra.mxu0 %v31_v11  ;;  %295 = vmatpush3.msra.mxu1 %v119_v12  ;;  %v116_v25 = vld [vmem:[%s476_s3] sm:$0xff]  ;;  %s214_s3 = sshll.u32 %s332_s20, 4  ;;  %s215_s3 = int_to_ptr.vmem [resolvable:$true] %s214_s3 }
   0xf   :  { %265 = vmatprep.subr.mxu0 %v330_v1  ;;  %296 = vmatprep.subr.mxu1 %v330_v1  ;;  %v222_v26 = vld [vmem:[%s475_s2] ss:$0 sm:$0xff]  ;;  %s308_s2 = scalar_lea.vmem %s215_s3, 128  ;;  %p313_p1 = scmp.lt.s32.totalorder %s215_s3, %s215_s3 }
  0x10   :  { %266 = vmatpush3.msra.mxu0 %v30_v13  ;;  %297 = vmatpush3.msra.mxu1 %v118_v23  ;;  %v223_v31 = vld [vmem:[%s477_s4] ss:$0 sm:$0xff]  ;;  %p309_p0 = scmp.ne.s32.totalorder %s215_s3, %s308_s2  ;;  %p314_p2 = scmp.lt.s32.totalorder %s308_s2, %s308_s2 }
  0x11   :  { %267 = vmatprep.subr.mxu0 %v330_v1  ;;  %298 = vmatprep.subr.mxu1 %v330_v1 }
  0x12   :  { %268 = vmatpush3.msra.mxu0 %v29_v14  ;;  %299 = vmatpush3.msra.mxu1 %v117_v24  ;;  %p315_p3 = por %p314_p2, %p313_p1 }
  0x13   :  { %269 = vmatprep.subr.mxu0 %v330_v1  ;;  %300 = vmatprep.subr.mxu1 %v330_v1 }
  0x14   :  { %270 = vmatpush3.msra.mxu0 %v28_v15  ;;  %301 = vmatpush3.msra.mxu1 %v116_v25  ;;  %p316_p4 = pnand %p315_p3, %p309_p0 }
  0x15   :  { %271 = vmatprep.subr.mxu0 %v330_v1 }
  0x16   :  { %272 = vmatpush3.msra.mxu0 %v27_v16 }
  0x17   :  { %273 = vmatprep.subr.mxu0 %v330_v1 }
  0x18   :  { %274 = vmatpush3.msra.mxu0 %v26_v17 }
  0x19   :  { %275 = vmatprep.subr.mxu0 %v330_v1 }
  0x1a   :  { %276 = vmatpush3.msra.mxu0 %v25_v18 }
  0x1b   :  { %277 = vmatprep.subr.mxu0 %v330_v1 }
  0x1c   :  { %278 = vmatpush3.msra.mxu0 %v24_v19 }
  0x1d   :  { %279 = vmatprep.subr.mxu0 %v330_v1 }
  0x1e   :  { %280 = vmatpush3.msra.mxu0 %v23_v20 }
  0x1f   :  { %281 = vmatprep.subr.mxu0 %v330_v1 }
  0x20   :  { %282 = vmatpush3.msra.mxu0 %v22_v21 }
  0x21   :  { %284 = vmatmul.mubr.f32.vlgmr.msra.gmra.mxu0 %v21_v22 }
  0xe1   :  { %v111_v27 = vpop.f32.mrf.mxu0 }
  0xe2   :  { %v112_v28 = vadd.f32 %v222_v26, %v111_v27 }
  0xe3   :  { %v285_v29 = vpop.f32.mrf.mxu0 }
  0xe4   :  { %v115_v30 = vmax.f32 %v112_v28, 0.0 }
  0xe6   :  { %303 = vmatmul.mubr.msk.f32.vlgmr.msra.gmra.mxu1 %vm131_vm1, %v115_v30 }
 0x1a6   :  { %v201_v32 = vpop.f32.mrf.mxu1 }
 0x1a7   :  { %v202_v33 = vadd.f32 %v223_v31, %v201_v32 }
 0x1a8   :  { %v304_v34 = vpop.f32.mrf.mxu1 }
 0x1a9   :  { %v205_v35 = vmax.f32 %v202_v33, 0.0 }
 0x1ab   :  { %v206_v36 = vadd.f32 %v205_v35, %v21_v22 }
 0x1ad   :  { %207 = vst [vmem:[#allocation2] sm:$0xff] %v206_v36 }
 0x1ae   :  { %319 = shalt.err (!%p316_p4)
}
 0x1af   :  { %217 = dma.vmem_to_hbm [thread:$0]  %s215_s3, 128, %s478_s5, [#allocation3]  }
 0x1b0   :  { %328 = dma.done.wait [#allocation3], 128  }
 0x1b1   :  { %329 = vsyncadd [#allocation3], 4294967168 }
 0x1b2   :  { %221 = vsyncpa [#allocation3], 1 }

</bundles_post_ra>
